<compile_context>
chip_gen: v6e
topology: v6e:2x2x1
jax: 0.10.0
libtpu: 0.0.40
codegen_flags: <defaults>
</compile_context>

<pallas_src>
import functools

import jax
import jax.numpy as jnp
import numpy as np
from jax import lax
from jax.experimental import pallas as pl
from jax.experimental.pallas import tpu as pltpu

# "config" values from the PyTorch module.
FEATURE_SIZE_H = 16
FEATURE_SIZE_W = 16


def _stair_loss_kernel(y1_ref, masks_ref, y2_ref, labels_ref, out_ref, *,
                       conf_scale, w_even, w_odd):
    """One-pass conf + loc loss.

    y1_ref, masks_ref : (N, H*W) in VMEM (lane-dense minor dim)
    y2_ref, labels_ref: (N, 8, H*W) in VMEM
    out_ref           : (1, 3) f32 in SMEM -> [conf_loss, loc_loss, total]
    conf_scale        : python float, 1 / (N*1*H*W)  (BCE 'mean' reduction)
    w_even / w_odd    : python floats, 4/(N*fh*fw) and 16/(N*fh*fw)
    """
    # Load in native dtype (bf16 inputs halve HBM->VMEM bytes), compute in f32.
    y1 = y1_ref[...].astype(jnp.float32)        # (N, HW)
    m = masks_ref[...].astype(jnp.float32)      # (N, HW)
    y2 = y2_ref[...].astype(jnp.float32)        # (N, 8, HW)
    lab = labels_ref[...].astype(jnp.float32)   # (N, 8, HW)

    # Numerically-stable BCE-with-logits; 'mean' folded into conf_scale.
    bce = jnp.maximum(y1, 0.0) - y1 * m + jnp.log(1.0 + jnp.exp(-jnp.abs(y1)))
    conf_loss = jnp.sum(bce) * conf_scale

    # Masked, channel-weighted squared error:
    #   sq * w  -> sum over channel (sublane) axis on the XLU -> one mask mul.
    diff = y2 - lab
    sq = diff * diff                                       # (N, 8, HW)
    ch = lax.broadcasted_iota(jnp.int32, (1, 8, 1), 1)     # in-kernel, no const
    w = jnp.where((ch % 2) == 0, jnp.float32(w_even), jnp.float32(w_odd))
    wsum = jnp.sum(sq * w, axis=1)                         # (N, HW)
    loc_loss = jnp.sum(wsum * m)

    out_ref[0, 0] = conf_loss
    out_ref[0, 1] = loc_loss
    out_ref[0, 2] = conf_loss + loc_loss


def stair_loss(y1, masks, y2, labels, *, fh=FEATURE_SIZE_H, fw=FEATURE_SIZE_W):
    """JAX wrapper.

    y1, masks: (N,1,H,W); y2, labels: (N,8,H,W). Any float dtype (bf16 ok).
    Returns a (3,) f32 array: [conf_loss, loc_loss, conf_loss + loc_loss].
    (The PyTorch module returns only the total and prints conf/loc; printing
    is left to the caller, host-side.)
    """
    n, c8, h, w_sp = y2.shape
    assert c8 == 8, f"expected 8 loc channels, got {c8}"
    assert (h, w_sp) == (fh, fw), (
        f"feature map {h}x{w_sp} does not match config {fh}x{fw}")
    # Exactly one conf channel: required for conf_scale = 1/(N*H*W) to be the
    # BCE 'mean'.
    assert y1.shape == (n, 1, h, w_sp) and masks.shape == (n, 1, h, w_sp)
    hw = h * w_sp

    # Contiguous, lane-dense reshapes; NO dtype cast here (bf16 stays bf16
    # across the DMA and is upcast inside the kernel).
    y1s = y1.reshape(n, hw)
    ms = masks.reshape(n, hw)
    y2f = y2.reshape(n, 8, hw)
    labf = labels.reshape(n, 8, hw)

    conf_scale = 1.0 / float(n * 1 * hw)          # BCE mean over all elements
    loc_scale = 1.0 / float(n * fh * fw)          # PyTorch loc normalization
    kernel = functools.partial(
        _stair_loss_kernel, conf_scale=conf_scale,
        w_even=4.0 * loc_scale, w_odd=16.0 * loc_scale)

    itemsize = jnp.dtype(y2f.dtype).itemsize
    cost = pl.CostEstimate(
        flops=6 * n * 8 * hw,
        transcendentals=2 * n * hw,
        bytes_accessed=(2 * n * 8 * hw + 2 * n * hw) * itemsize,
    )

    out = pl.pallas_call(
        kernel,
        out_shape=jax.ShapeDtypeStruct((1, 3), jnp.float32),
        in_specs=[pl.BlockSpec(memory_space=pltpu.MemorySpace.VMEM)] * 4,
        out_specs=pl.BlockSpec(memory_space=pltpu.MemorySpace.SMEM),
        cost_estimate=cost,
    )(y1s, ms, y2f, labf)
    # TODO(synk): for large N (~>1-2K samples; budget against v7x's 64 MiB
    # physical VMEM), switch to a 1-D 'parallel' batch grid with a scalar
    # accumulator in scratch and pl.when init/finalize.
    return out[0]


def _reference(y1, masks, y2, labels, fh=FEATURE_SIZE_H, fw=FEATURE_SIZE_W):
    """Pure-JAX reference mirroring the PyTorch semantics."""
    y1 = y1.astype(jnp.float32)
    masks = masks.astype(jnp.float32)
    y2 = y2.astype(jnp.float32)
    labels = labels.astype(jnp.float32)
    n_batch = labels.shape[0]
    bce = jnp.maximum(y1, 0.0) - y1 * masks + jnp.log(1.0 + jnp.exp(-jnp.abs(y1)))
    conf_loss = jnp.mean(bce)
    loc_vec = (y2 - labels) ** 2
    loc_sum_x = jnp.sum(loc_vec[:, 0:8:2], axis=1, keepdims=True)
    loc_sum_y = jnp.sum(loc_vec[:, 1:8:2], axis=1, keepdims=True)
    loc_loss_x = jnp.sum(masks * loc_sum_x)
    loc_loss_y = jnp.sum(masks * loc_sum_y)
    loc_loss = (4.0 * loc_loss_x + 16.0 * loc_loss_y) / (n_batch * fh * fw)
    return jnp.array([conf_loss, loc_loss, conf_loss + loc_loss], jnp.float32)


if __name__ == "__main__":
    key = jax.random.PRNGKey(0)
    k1, k2, k3, k4 = jax.random.split(key, 4)

    N, H, W = 2, FEATURE_SIZE_H, FEATURE_SIZE_W
    y1 = jax.random.normal(k1, (N, 1, H, W), jnp.float32)        # conf logits
    masks = jax.random.bernoulli(k2, 0.3, (N, 1, H, W)).astype(jnp.float32)
    y2 = jax.random.normal(k3, (N, 8, H, W), jnp.float32)        # loc predictions
    labels = jax.random.normal(k4, (N, 8, H, W), jnp.float32)    # loc targets

    out = jax.block_until_ready(stair_loss(y1, masks, y2, labels))
    ref = jax.block_until_ready(_reference(y1, masks, y2, labels))

    np.testing.assert_allclose(np.asarray(out), np.asarray(ref),
                               rtol=1e-5, atol=1e-5)
    print("KERNEL_OK")
</pallas_src>

<mosaic_0001>
module attributes {stable_mosaic.version = 11 : i64} {
  func.func @_stair_loss_kernel(%arg0: memref<2x256xf32, #tpu.memory_space<vmem>>, %arg1: memref<2x256xf32, #tpu.memory_space<vmem>>, %arg2: memref<2x8x256xf32, #tpu.memory_space<vmem>>, %arg3: memref<2x8x256xf32, #tpu.memory_space<vmem>>, %arg4: memref<1x3xf32, #tpu.memory_space<smem>>) attributes {dimension_semantics = [], scalar_prefetch = 0 : i64, scratch_operands = 0 : i64, tpu.core_type = #tpu.core_type<tc>} {
    %c0 = arith.constant 0 : index
    %c0_0 = arith.constant 0 : index
    %0 = vector.load %arg0[%c0, %c0_0] : memref<2x256xf32, #tpu.memory_space<vmem>>, vector<2x256xf32>
    %c0_1 = arith.constant 0 : index
    %c0_2 = arith.constant 0 : index
    %1 = vector.load %arg1[%c0_1, %c0_2] : memref<2x256xf32, #tpu.memory_space<vmem>>, vector<2x256xf32>
    %c0_3 = arith.constant 0 : index
    %c0_4 = arith.constant 0 : index
    %c0_5 = arith.constant 0 : index
    %2 = vector.load %arg2[%c0_3, %c0_4, %c0_5] : memref<2x8x256xf32, #tpu.memory_space<vmem>>, vector<2x8x256xf32>
    %c0_6 = arith.constant 0 : index
    %c0_7 = arith.constant 0 : index
    %c0_8 = arith.constant 0 : index
    %3 = vector.load %arg3[%c0_6, %c0_7, %c0_8] : memref<2x8x256xf32, #tpu.memory_space<vmem>>, vector<2x8x256xf32>
    %cst = arith.constant 0.000000e+00 : f32
    %4 = vector.broadcast %cst : f32 to vector<2x256xf32>
    %5 = arith.maximumf %0, %4 : vector<2x256xf32>
    %6 = arith.mulf %0, %1 : vector<2x256xf32>
    %7 = arith.subf %5, %6 : vector<2x256xf32>
    %8 = math.absf %0 : vector<2x256xf32>
    %cst_9 = arith.constant 0.000000e+00 : f32
    %9 = vector.broadcast %cst_9 : f32 to vector<2x256xf32>
    %10 = arith.subf %9, %8 : vector<2x256xf32>
    %11 = math.exp %10 : vector<2x256xf32>
    %cst_10 = arith.constant 1.000000e+00 : f32
    %12 = vector.broadcast %cst_10 : f32 to vector<2x256xf32>
    %13 = arith.addf %12, %11 : vector<2x256xf32>
    %14 = math.log %13 : vector<2x256xf32>
    %15 = arith.addf %7, %14 : vector<2x256xf32>
    %16 = vector.shape_cast %15 : vector<2x256xf32> to vector<1x2x256xf32>
    %cst_11 = arith.constant dense<0.000000e+00> : vector<1xf32>
    %17 = vector.multi_reduction <add>, %16, %cst_11 [1, 2] : vector<1x2x256xf32> to vector<1xf32>
    %18 = vector.shape_cast %17 : vector<1xf32> to vector<1x1x1xf32>
    %19 = vector.extract %18[0, 0, 0] : f32 from vector<1x1x1xf32>
    %cst_12 = arith.constant 0.001953125 : f32
    %20 = arith.mulf %19, %cst_12 : f32
    %21 = arith.subf %2, %3 : vector<2x8x256xf32>
    %22 = arith.mulf %21, %21 : vector<2x8x256xf32>
    %23 = tpu.iota {dimensions = array<i32: 1>} : vector<1x8x1xi32>
    %c2_i32 = arith.constant 2 : i32
    %c0_i32 = arith.constant 0 : i32
    %24 = arith.cmpi eq, %c2_i32, %c0_i32 : i32
    %c1_i32 = arith.constant 1 : i32
    %25 = arith.select %24, %c1_i32, %c2_i32 : i32
    %26 = vector.broadcast %25 : i32 to vector<1x8x1xi32>
    %27 = arith.remsi %23, %26 : vector<1x8x1xi32>
    %c0_i32_13 = arith.constant 0 : i32
    %28 = vector.broadcast %c0_i32_13 : i32 to vector<1x8x1xi32>
    %29 = arith.cmpi ne, %27, %28 : vector<1x8x1xi32>
    %c0_i32_14 = arith.constant 0 : i32
    %30 = vector.broadcast %c0_i32_14 : i32 to vector<1x8x1xi32>
    %31 = arith.cmpi slt, %27, %30 : vector<1x8x1xi32>
    %c0_i32_15 = arith.constant 0 : i32
    %32 = arith.cmpi slt, %25, %c0_i32_15 : i32
    %33 = vector.broadcast %32 : i1 to vector<1x8x1xi1>
    %34 = vector.broadcast %33 : vector<1x8x1xi1> to vector<1x8x1xi1>
    %35 = arith.xori %31, %34 : vector<1x8x1xi1>
    %36 = arith.andi %35, %29 : vector<1x8x1xi1>
    %37 = vector.broadcast %25 : i32 to vector<1x8x1xi32>
    %38 = arith.addi %27, %37 : vector<1x8x1xi32>
    %39 = arith.select %36, %38, %27 : vector<1x8x1xi1>, vector<1x8x1xi32>
    %c0_i32_16 = arith.constant 0 : i32
    %40 = vector.broadcast %c0_i32_16 : i32 to vector<1x8x1xi32>
    %41 = arith.cmpi eq, %39, %40 : vector<1x8x1xi32>
    %cst_17 = arith.constant 7.812500e-03 : f32
    %cst_18 = arith.constant 3.125000e-02 : f32
    %42 = vector.broadcast %cst_17 : f32 to vector<1x8x1xf32>
    %43 = vector.broadcast %cst_18 : f32 to vector<1x8x1xf32>
    %44 = arith.select %41, %42, %43 : vector<1x8x1xi1>, vector<1x8x1xf32>
    %45 = vector.broadcast %44 : vector<1x8x1xf32> to vector<2x8x256xf32>
    %46 = arith.mulf %22, %45 : vector<2x8x256xf32>
    %cst_19 = arith.constant dense<0.000000e+00> : vector<2x256xf32>
    %47 = vector.multi_reduction <add>, %46, %cst_19 [1] : vector<2x8x256xf32> to vector<2x256xf32>
    %48 = arith.mulf %47, %1 : vector<2x256xf32>
    %49 = vector.shape_cast %48 : vector<2x256xf32> to vector<1x2x256xf32>
    %cst_20 = arith.constant dense<0.000000e+00> : vector<1xf32>
    %50 = vector.multi_reduction <add>, %49, %cst_20 [1, 2] : vector<1x2x256xf32> to vector<1xf32>
    %51 = vector.shape_cast %50 : vector<1xf32> to vector<1x1x1xf32>
    %52 = vector.extract %51[0, 0, 0] : f32 from vector<1x1x1xf32>
    %c0_21 = arith.constant 0 : index
    %c0_22 = arith.constant 0 : index
    %53 = memref.load %arg4[%c0_21, %c0_22] : memref<1x3xf32, #tpu.memory_space<smem>>
    memref.store %20, %arg4[%c0_21, %c0_22] : memref<1x3xf32, #tpu.memory_space<smem>>
    %c0_23 = arith.constant 0 : index
    %c1 = arith.constant 1 : index
    %54 = memref.load %arg4[%c0_23, %c1] : memref<1x3xf32, #tpu.memory_space<smem>>
    memref.store %52, %arg4[%c0_23, %c1] : memref<1x3xf32, #tpu.memory_space<smem>>
    %55 = arith.addf %20, %52 : f32
    %c0_24 = arith.constant 0 : index
    %c2 = arith.constant 2 : index
    %56 = memref.load %arg4[%c0_24, %c2] : memref<1x3xf32, #tpu.memory_space<smem>>
    memref.store %55, %arg4[%c0_24, %c2] : memref<1x3xf32, #tpu.memory_space<smem>>
    return
  }
}

</mosaic_0001>

<bundles_post_ra>
// kernel: tpu_custom_call.1
= control target key start
LH: loop header
LB: loop body
LE: loop exit
PB: predicated region body
PF: predicated region fallthrough
CT: control target
= control target key end

     0   :  { %9 = vsyncpa [#allocation3], 0  ;;  %s399_s0 = inlined_call_operand.hbm [shape: f32[2,256], index: 0, kind: input, shape index: {}]   ;;  %s400_s1 = inlined_call_operand.hbm [shape: f32[2,256], index: 1, kind: input, shape index: {}]   ;;  %s401_s2 = inlined_call_operand.hbm [shape: f32[2,8,256], index: 2, kind: input, shape index: {}]   ;;  %s402_s3 = inlined_call_operand.hbm [shape: f32[2,8,256], index: 3, kind: input, shape index: {}]   ;;  %s403_s4 = inlined_call_operand.hbm [shape: f32[1,3], index: 4, kind: output, shape index: {}]  }
   0x1   :  { %10 = vsyncpa [#allocation6], 0 }
   0x2   :  { %11 = vsyncpa [#allocation9], 0 }
   0x3   :  { %12 = vsyncpa [#allocation4], 0  ;;  %s345_s15 = smov [#allocation5]   ;;  %s346_s17 = smov [#allocation2]  }
   0x4   :  { %s29_s16 = sshll.u32 %s345_s15, 4  ;;  %s19_s18 = sshll.u32 %s346_s17, 4  ;;  %s30_s16 = int_to_ptr.vmem [resolvable:$true] %s29_s16  ;;  %s20_s18 = int_to_ptr.vmem [resolvable:$true] %s19_s18 }
   0x5   :  { %s257_s19 = scalar_lea.vmem %s30_s16, 64  ;;  %p262_p1 = scmp.lt.s32.totalorder %s30_s16, %s30_s16 }
   0x6   :  { %p258_p0 = scmp.ne.s32.totalorder %s30_s16, %s257_s19  ;;  %p263_p2 = scmp.lt.s32.totalorder %s257_s19, %s257_s19 }
   0x8   :  { %p264_p3 = por %p263_p2, %p262_p1 }
   0xa   :  { %p265_p4 = pnand %p264_p3, %p258_p0 }
   0xc   :  { %268 = shalt.err (!%p265_p4)
}
   0xd   :  { %32 = dma.hbm_to_vmem [thread:$0]  %s400_s1, 64, %s30_s16, [#allocation6]  }
   0xe   :  { %s277_s22 = scalar_lea.vmem %s20_s18, 64  ;;  %p282_p6 = scmp.lt.s32.totalorder %s20_s18, %s20_s18 }
   0xf   :  { %p278_p5 = scmp.ne.s32.totalorder %s20_s18, %s277_s22  ;;  %p283_p7 = scmp.lt.s32.totalorder %s277_s22, %s277_s22 }
  0x11   :  { %p284_p8 = por %p283_p7, %p282_p6 }
  0x13   :  { %p285_p9 = pnand %p284_p8, %p278_p5 }
  0x15   :  { %288 = shalt.err (!%p285_p9)
}
  0x16   :  { %22 = dma.hbm_to_vmem [thread:$0]  %s399_s0, 64, %s20_s18, [#allocation3]  }
  0x17   :  { %s347_s25 = smov [#allocation7]  }
  0x18   :  { %s38_s26 = sshll.u32 %s347_s25, 4  ;;  %s39_s26 = int_to_ptr.vmem [resolvable:$true] %s38_s26 }
  0x19   :  { %s297_s27 = scalar_lea.vmem %s39_s26, 512  ;;  %p302_p11 = scmp.lt.s32.totalorder %s39_s26, %s39_s26 }
  0x1a   :  { %p298_p10 = scmp.ne.s32.totalorder %s39_s26, %s297_s27  ;;  %p303_p12 = scmp.lt.s32.totalorder %s297_s27, %s297_s27 }
  0x1c   :  { %p304_p13 = por %p303_p12, %p302_p11 }
  0x1e   :  { %p305_p0 = pnand %p304_p13, %p298_p10 }
  0x20   :  { %308 = shalt.err (!%p305_p0)
}
  0x21   :  { %s348_s1 = smov 256   ;;  %s349_s28 = smov 16  }
  0x22   :  { %44 = dma.hbm_to_vmem [thread:$0]  %s401_s2, 512, %s39_s26, [#allocation6], %s348_s1, %s348_s1, %s349_s28  }
  0x23   :  { %s350_s5 = smov [#allocation8]  }
  0x24   :  { %s50_s6 = sshll.u32 %s350_s5, 4  ;;  %s51_s6 = int_to_ptr.vmem [resolvable:$true] %s50_s6 }
  0x25   :  { %s317_s0 = scalar_lea.vmem %s51_s6, 512  ;;  %p322_p2 = scmp.lt.s32.totalorder %s51_s6, %s51_s6 }
  0x26   :  { %p318_p1 = scmp.ne.s32.totalorder %s51_s6, %s317_s0  ;;  %p323_p3 = scmp.lt.s32.totalorder %s317_s0, %s317_s0 }
  0x28   :  { %p324_p4 = por %p323_p3, %p322_p2 }
  0x2a   :  { %p325_p5 = pnand %p324_p4, %p318_p1 }
  0x2c   :  { %328 = shalt.err (!%p325_p5)
}
  0x2d   :  { %56 = dma.hbm_to_vmem [thread:$0]  %s402_s3, 512, %s51_s6, [#allocation9], %s348_s1, %s348_s1, %s349_s28  }
  0x2e   :  { %337 = dma.done.wait [#allocation3], 64  }
  0x2f   :  { %338 = vsyncadd [#allocation3], 4294967232 }
  0x30   :  { %339 = dma.done.wait [#allocation6], 576  }
  0x31   :  { %340 = vsyncadd [#allocation6], 4294966720 }
  0x32   :  { %341 = dma.done.wait [#allocation9], 512  }
  0x33   :  { %342 = vsyncadd [#allocation9], 4294966784  ;;  %v94_v0 = vlaneseq  ;;  %v391_v3 = vld [vmem:[#allocation2] sm:$0xf]  ;;  %v71_v4 = vld [vmem:[#allocation7] sm:$0xff]  ;;  %v351_v19 = vmov 0.03125  }
  0x34   :  { %v72_v5 = vld [vmem:[#allocation7 + $0x8] sm:$0xff]  ;;  %v73_v6 = vld [vmem:[#allocation7 + $0x10] sm:$0xff]  ;;  %v74_v7 = vld [vmem:[#allocation7 + $0x18] sm:$0xff]  ;;  %v82_v8 = vand.u32 2147483647, %v391_v3  ;;  %v79_v62 = vmax.f32 %v391_v3, 0.0 }
  0x35   :  { %v95_v1 = vshrl.u32 %v94_v0, 7  ;;  %v75_v9 = vld [vmem:[#allocation8] sm:$0xff]  ;;  %v76_v10 = vld [vmem:[#allocation8 + $0x8] sm:$0xff]  ;;  %v77_v11 = vld [vmem:[#allocation8 + $0x10] sm:$0xff]  ;;  %v352_v27 = vmov 1983009808  }
  0x36   :  { %v78_v12 = vld [vmem:[#allocation8 + $0x18] sm:$0xff]  ;;  %v83_v13 = vsub.f32 0.0, %v82_v8  ;;  %v115_v14 = vsub.f32 %v71_v4, %v75_v9  ;;  %v116_v15 = vsub.f32 %v72_v5, %v76_v10  ;;  %v117_v16 = vsub.f32 %v73_v6, %v77_v11  ;;  %s353_s11 = smov [#allocation10]  }
  0x37   :  { %v129_v2 = vand.u32 1, %v95_v1  ;;  %v118_v17 = vsub.f32 %v74_v7, %v78_v12  ;;  %v92_v28 = vunpack.c.l.s4 %v352_v27  ;;  %v70_v44 = vld [vmem:[#allocation5] sm:$0xf]  ;;  %vm191_vm1 = vcmask 1041409  }
  0x38   :  { %v84_v18 = vmul.f32 1.442695, %v83_v13  ;;  %v119_v21 = vmul.f32 %v115_v14, %v115_v14  ;;  %v120_v22 = vmul.f32 %v116_v15, %v116_v15  ;;  %v121_v23 = vmul.f32 %v117_v16, %v117_v16 }
  0x39   :  { %vm137_vm0 = vcmp.eq.s32.totalorder %v129_v2, 0  ;;  %v122_v24 = vmul.f32 %v118_v17, %v118_v17  ;;  %v93_v33 = vunpack.c.0.s8 %v92_v28  ;;  %v80_v63 = vmul.f32 %v70_v44, %v391_v3 }
  0x3a   :  { %v138_v20 = vsel %vm137_vm0, 0.0078125, %v351_v19  ;;  %245 = vpow2.f32 %v84_v18  ;;  %vm101_vm2 = vcmask 1041408  }
  0x3b   :  { %v141_v25 = vmul.f32 %v138_v20, %v121_v23  ;;  %v142_v26 = vmul.f32 %v138_v20, %v122_v24  ;;  %v139_v29 = vmul.f32 %v138_v20, %v119_v21  ;;  %v140_v30 = vmul.f32 %v138_v20, %v120_v22 }
  0x3c   :  { %v96_v38 = vsub.s32 %v93_v33, %v95_v1  ;;  %v81_v5 = vsub.f32 %v79_v62, %v80_v63 }
  0x3d   :  { %v155_v31 = vrot.slane %v141_v25, 4  ;;  %v161_v32 = vrot.slane %v142_v26, 4  ;;  %v143_v34 = vrot.slane %v139_v29, 4  ;;  %v149_v35 = vrot.slane %v140_v30, 4 }
  0x3e   :  { %v174_v46 = vrot.slane %v70_v44, %v96_v38 }
  0x3f   :  { %v156_v36 = vadd.f32 %v155_v31, %v141_v25  ;;  %v162_v37 = vadd.f32 %v161_v32, %v142_v26  ;;  %v144_v39 = vadd.f32 %v143_v34, %v139_v29  ;;  %v150_v40 = vadd.f32 %v149_v35, %v140_v30 }
  0x40   :  { %v175_v51 = vcombine.high %v174_v46, %v174_v46  ;;  %v176_v56 = vrot.slane %v174_v46, 1 }
  0x41   :  { %v157_v41 = vrot.slane %v156_v36, 2  ;;  %v163_v42 = vrot.slane %v162_v37, 2  ;;  %v145_v47 = vrot.slane %v144_v39, 2  ;;  %v151_v48 = vrot.slane %v150_v40, 2 }
  0x42   :  { %v177_v57 = vrot.slane %v175_v51, 1 }
  0x43   :  { %v158_v49 = vadd.f32 %v157_v41, %v156_v36  ;;  %v164_v50 = vadd.f32 %v163_v42, %v162_v37  ;;  %v146_v52 = vadd.f32 %v145_v47, %v144_v39  ;;  %v152_v53 = vadd.f32 %v151_v48, %v150_v40 }
  0x45   :  { %v159_v54 = vrot.slane %v158_v49, 1  ;;  %v165_v55 = vrot.slane %v164_v50, 1  ;;  %v147_v58 = vrot.slane %v146_v52, 1  ;;  %v153_v59 = vrot.slane %v152_v53, 1 }
  0x47   :  { %v246_v43 = vpop.eup %245  ;;  %v160_v60 = vadd.f32 %v159_v54, %v158_v49  ;;  %v166_v61 = vadd.f32 %v165_v55, %v164_v50  ;;  %v148_v0 = vadd.f32 %v147_v58, %v146_v52  ;;  %v154_v1 = vadd.f32 %v153_v59, %v152_v53 }
  0x48   :  { %v86_v45 = vadd.f32 1.0, %v246_v43 }
  0x49   :  { %v184_v2 = vmul.f32 %v176_v56, %v160_v60  ;;  %v185_v4 = vmul.f32 %v177_v57, %v166_v61  ;;  %v182_v8 = vmul.f32 %v174_v46, %v148_v0  ;;  %v183_v9 = vmul.f32 %v175_v51, %v154_v1 }
  0x4a   :  { %247 = vlog2.f32 %v86_v45 }
  0x4b   :  { %v190_v10 = vrot.slane %v184_v2, 7  ;;  %v193_v11 = vrot.slane %v185_v4, 7 }
  0x4d   :  { %v192_v14 = vsel %vm191_vm1, %v190_v10, %v182_v8  ;;  %v194_v15 = vsel %vm191_vm1, %v193_v11, %v183_v9 }
  0x4e   :  { %v197_v18 = vsel %vm101_vm2, %v192_v14, 0.0  ;;  %v198_v19 = vsel %vm101_vm2, %v194_v15, 0.0 }
  0x4f   :  { %v199_v21 = vadd.f32 %v198_v19, %v197_v18 }
  0x57   :  { %v248_v6 = vpop.eup %247 }
  0x58   :  { %v88_v7 = vmul.f32 0.6931472, %v248_v6 }
  0x5a   :  { %v89_v12 = vadd.f32 %v88_v7, %v81_v5 }
  0x5c   :  { %v97_v13 = vrot.slane %v89_v12, %v96_v38 }
  0x5e   :  { %v98_v16 = vcombine.high %v97_v13, %v97_v13  ;;  %v102_v17 = vsel %vm101_vm2, %v97_v13, 0.0 }
  0x60   :  { %v103_v3 = vsel %vm101_vm2, %v98_v16, 0.0 }
  0x61   :  { %v104_v20 = vadd.f32 %v103_v3, %v102_v17 }
  0x63   :  { %105 = vadd.xlane.f32.xlu0 %v104_v20 }
  0x67   :  { %200 = vadd.xlane.f32.xlu0 %v199_v21 }
  0xec   :  { %v106_v22 = vpop.xlane.xlu0 %105 }
  0xed   :  { %v107_v23 = vrot.slane %v106_v22, 4 }
  0xef   :  { %v108_v24 = vadd.f32 %v107_v23, %v106_v22 }
  0xf0   :  { %v201_v25 = vpop.xlane.xlu0 %200 }
  0xf1   :  { %v109_v26 = vrot.slane %v108_v24, 2  ;;  %v202_v27 = vrot.slane %v201_v25, 4 }
  0xf3   :  { %v203_v28 = vadd.f32 %v202_v27, %v201_v25  ;;  %v110_v29 = vadd.f32 %v109_v26, %v108_v24 }
  0xf5   :  { %v204_v30 = vrot.slane %v203_v28, 2  ;;  %v111_v31 = vrot.slane %v110_v29, 1 }
  0xf7   :  { %v205_v32 = vadd.f32 %v204_v30, %v203_v28  ;;  %v112_v33 = vadd.f32 %v111_v31, %v110_v29 }
  0xf9   :  { %232 = vpush %v112_v33  ;;  %v206_v34 = vrot.slane %v205_v32, 1 }
  0xfb   :  { %v207_v35 = vadd.f32 %v206_v34, %v205_v32 }
  0xfd   :  { %234 = vpush %v207_v35 }
 0x12a   :  { %s233_s2 = spop %232 }
 0x12b   :  { %s114_s3 = smul.f32 0.001953125, %s233_s2 }
 0x12d   :  { %210 = sst [smem:[#allocation10]] %s114_s3 }
 0x12e   :  { %s235_s9 = spop %234 }
 0x12f   :  { %212 = sst [smem:[#allocation10 + $0x1]] %s235_s9 }
 0x130   :  { %s213_s10 = sadd.f32 %s235_s9, %s114_s3 }
 0x132   :  { %215 = sst [smem:[#allocation10 + $0x2]] %s213_s10 }
 0x133   :  { %223 = dma.smem_to_hbm %s353_s11, 16, %s403_s4, [#allocation4]  }
 0x134   :  { %343 = dma.done.wait [#allocation4], 16  }
 0x135   :  { %344 = vsyncadd [#allocation4], 4294967280 }
 0x136   :  { %227 = sfence }
 0x137   :  { %228 = vsyncpa [#allocation3], 1 }
 0x138   :  { %229 = vsyncpa [#allocation6], 1 }
 0x139   :  { %230 = vsyncpa [#allocation9], 1 }
 0x13a   :  { %231 = vsyncpa [#allocation4], 1 }

</bundles_post_ra>
